<compile_context>
chip_gen: v7x
topology: tpu7x:2x2x1
jax: 0.10.0
libtpu: 0.0.40
codegen_flags: <defaults>
</compile_context>

<pallas_src>
import functools

import jax
import jax.numpy as jnp
from jax.experimental import pallas as pl
from jax.experimental.pallas import tpu as pltpu

LOG_STD_MAX = 2.0
LOG_STD_MIN = -20.0


def _round_up(x, m):
    return ((x + m - 1) // m) * m


def _normal_params_kernel(x_ref, w_ref, b_ref, out_ref, *, event_size):
    """One batch tile: fused [loc | log_scale] matmul, clamp+exp on scale cols."""
    x = x_ref[...]
    # Single fused matmul over both heads (cols [0, E) -> loc, [E, 2E) -> log_scale).
    y = jnp.dot(x, w_ref[...], preferred_element_type=jnp.float32) + b_ref[...]
    # Lane-index mask: loc columns pass through, scale columns get clamp+exp.
    col = jax.lax.broadcasted_iota(jnp.int32, y.shape, 1)
    scale = jnp.exp(jnp.clip(y, LOG_STD_MIN, LOG_STD_MAX))
    out_ref[...] = jnp.where(col < event_size, y, scale).astype(out_ref.dtype)


def normal_params(x, w_loc, b_loc, w_scale, b_scale, *, block_b=512):
    """x: [B, F]; w_*: [F, E]; b_*: [1, E] -> dict(loc=[B, E], scale=[B, E])."""
    B, F = x.shape
    E = w_loc.shape[1]
    N = 2 * E
    # Lane-dense fused output: pad 2E up to a multiple of 128.
    N_pad = _round_up(max(N, 128), 128)

    # Fuse the two heads into one weight/bias slab; zero-pad extra lanes.
    w_cat = jnp.concatenate([w_loc, w_scale], axis=1)
    w_cat = jnp.pad(w_cat, ((0, 0), (0, N_pad - N)))
    b_cat = jnp.concatenate([b_loc.reshape(1, E), b_scale.reshape(1, E)], axis=1)
    b_cat = jnp.pad(b_cat, ((0, 0), (0, N_pad - N)))

    # Batch tiling: TB multiple of 8 (f32 sublane), capped at block_b.
    TB = min(block_b, _round_up(B, 8))
    TB = _round_up(TB, 8)
    B_pad = _round_up(B, TB)
    x_pad = jnp.pad(x, ((0, B_pad - B), (0, 0))) if B_pad != B else x

    grid = (B_pad // TB,)

    out = pl.pallas_call(
        functools.partial(_normal_params_kernel, event_size=E),
        out_shape=jax.ShapeDtypeStruct((B_pad, N_pad), x.dtype),
        grid=grid,
        in_specs=[
            pl.BlockSpec((TB, F), lambda i: (i, 0)),       # x tile (pipelined)
            pl.BlockSpec((F, N_pad), lambda i: (0, 0)),    # fused weights (resident)
            pl.BlockSpec((1, N_pad), lambda i: (0, 0)),    # fused bias (resident)
        ],
        out_specs=pl.BlockSpec((TB, N_pad), lambda i: (i, 0)),
        compiler_params=pltpu.CompilerParams(
            dimension_semantics=("parallel",),
        ),
    )(x_pad, w_cat, b_cat)

    loc = out[:B, :E]
    scale = out[:B, E:N]
    return {"loc": loc, "scale": scale}


def _orthogonal(key, rows, cols, gain):
    """Deterministic orthogonal init (mirrors initialize_('orthogonal', gain))."""
    a = jax.random.normal(key, (max(rows, cols), min(rows, cols)), jnp.float32)
    q, r = jnp.linalg.qr(a)
    q = q * jnp.sign(jnp.diag(r))  # make deterministic / uniform
    if rows < cols:
        q = q.T
    return gain * q[:rows, :cols]


def _reference(x, w_loc, b_loc, w_scale, b_scale):
    loc = x @ w_loc + b_loc
    ls = jnp.clip(x @ w_scale + b_scale, LOG_STD_MIN, LOG_STD_MAX)
    return {"loc": loc, "scale": jnp.exp(ls)}


if __name__ == "__main__":
    key = jax.random.PRNGKey(0)
    k_x, k_x2, k_wl, k_ws = jax.random.split(key, 4)

    F, E = 32, 16  # in_features, event_size

    # Parameters: orthogonal weights with gain=0.01, zero biases (as in
    # apply(initialize_('orthogonal', gain=0.01))). Stored as [F, E].
    w_loc = _orthogonal(k_wl, F, E, 0.01)
    b_loc = jnp.zeros((1, E), jnp.float32)
    w_scale = _orthogonal(k_ws, F, E, 0.01)
    b_scale = jnp.zeros((1, E), jnp.float32)

    # Small batch (single grid step).
    B = 8
    x = jax.random.normal(k_x, (B, F), jnp.float32)
    out = normal_params(x, w_loc, b_loc, w_scale, b_scale)
    jax.block_until_ready(out)
    ref = _reference(x, w_loc, b_loc, w_scale, b_scale)
    assert out["loc"].shape == (B, E) and out["scale"].shape == (B, E)
    assert jnp.allclose(out["loc"], ref["loc"], atol=1e-5, rtol=1e-5)
    assert jnp.allclose(out["scale"], ref["scale"], atol=1e-5, rtol=1e-5)

    # Slightly larger, non-aligned batch to exercise padding + tiling path.
    B2 = 100
    x2 = jax.random.normal(k_x2, (B2, F), jnp.float32)
    out2 = normal_params(x2, w_loc, b_loc, w_scale, b_scale, block_b=64)
    jax.block_until_ready(out2)
    ref2 = _reference(x2, w_loc, b_loc, w_scale, b_scale)
    assert out2["loc"].shape == (B2, E) and out2["scale"].shape == (B2, E)
    assert jnp.allclose(out2["loc"], ref2["loc"], atol=1e-5, rtol=1e-5)
    assert jnp.allclose(out2["scale"], ref2["scale"], atol=1e-5, rtol=1e-5)

    print("KERNEL_OK")
</pallas_src>

<mosaic_0001>
module attributes {stable_mosaic.version = 11 : i64} {
  func.func @_normal_params_kernel(%arg0: i32, %arg1: memref<8x32xf32, #tpu.memory_space<vmem>>, %arg2: memref<32x128xf32, #tpu.memory_space<vmem>>, %arg3: memref<1x128xf32, #tpu.memory_space<vmem>>, %arg4: memref<8x128xf32, #tpu.memory_space<vmem>>) attributes {dimension_semantics = [#tpu.dimension_semantics<parallel>], iteration_bounds = array<i64: 1>, scalar_prefetch = 0 : i64, scratch_operands = 0 : i64, tpu.core_type = #tpu.core_type<tc>, window_params = [{transform_indices = @transform_0, window_bounds = array<i64: 8, 32>}, {pipeline_mode = #tpu.pipeline_mode<synchronous>, transform_indices = @transform_1, window_bounds = array<i64: 32, 128>}, {pipeline_mode = #tpu.pipeline_mode<synchronous>, transform_indices = @transform_2, window_bounds = array<i64: 1, 128>}, {transform_indices = @transform_3, window_bounds = array<i64: 8, 128>}]} {
    %c0 = arith.constant 0 : index
    %c0_0 = arith.constant 0 : index
    %0 = vector.load %arg1[%c0, %c0_0] : memref<8x32xf32, #tpu.memory_space<vmem>>, vector<8x32xf32>
    %c0_1 = arith.constant 0 : index
    %c0_2 = arith.constant 0 : index
    %1 = vector.load %arg2[%c0_1, %c0_2] : memref<32x128xf32, #tpu.memory_space<vmem>>, vector<32x128xf32>
    %cst = arith.constant dense<0.000000e+00> : vector<8x128xf32>
    %2 = tpu.matmul %0, %1, %cst {dimension_numbers = #tpu.dot_dimension_numbers<[1], [0], [0], [1], [0, 0, 1, 1], [], []>} : vector<8x32xf32>, vector<32x128xf32>, vector<8x128xf32> -> vector<8x128xf32>
    %c0_3 = arith.constant 0 : index
    %c0_4 = arith.constant 0 : index
    %3 = vector.load %arg3[%c0_3, %c0_4] : memref<1x128xf32, #tpu.memory_space<vmem>>, vector<1x128xf32>
    %4 = vector.broadcast %3 : vector<1x128xf32> to vector<8x128xf32>
    %5 = arith.addf %2, %4 : vector<8x128xf32>
    %6 = tpu.iota {dimensions = array<i32: 1>} : vector<8x128xi32>
    %cst_5 = arith.constant -2.000000e+01 : f32
    %cst_6 = arith.constant 2.000000e+00 : f32
    %7 = vector.broadcast %cst_5 : f32 to vector<8x128xf32>
    %8 = arith.maximumf %7, %5 : vector<8x128xf32>
    %9 = vector.broadcast %cst_6 : f32 to vector<8x128xf32>
    %10 = arith.minimumf %9, %8 : vector<8x128xf32>
    %11 = math.exp %10 : vector<8x128xf32>
    %c16_i32 = arith.constant 16 : i32
    %12 = vector.broadcast %c16_i32 : i32 to vector<8x128xi32>
    %13 = arith.cmpi slt, %6, %12 : vector<8x128xi32>
    %14 = arith.select %13, %5, %11 : vector<8x128xi1>, vector<8x128xf32>
    %c0_7 = arith.constant 0 : index
    %c0_8 = arith.constant 0 : index
    %15 = vector.load %arg4[%c0_7, %c0_8] : memref<8x128xf32, #tpu.memory_space<vmem>>, vector<8x128xf32>
    tpu.vector_store %arg4[%c0_7, %c0_8], %14 {strides = array<i32>} : memref<8x128xf32, #tpu.memory_space<vmem>>, vector<8x128xf32>,
    return
  }
  func.func @transform_0(%arg0: i32) -> (i32, i32) {
    %c0_i32 = arith.constant 0 : i32
    %c0_i32_0 = arith.constant 0 : i32
    return %arg0, %c0_i32 : i32, i32
  }
  func.func @transform_1(%arg0: i32) -> (i32, i32) {
    %c0_i32 = arith.constant 0 : i32
    %c0_i32_0 = arith.constant 0 : i32
    %c0_i32_1 = arith.constant 0 : i32
    return %c0_i32, %c0_i32_0 : i32, i32
  }
  func.func @transform_2(%arg0: i32) -> (i32, i32) {
    %c0_i32 = arith.constant 0 : i32
    %c0_i32_0 = arith.constant 0 : i32
    %c0_i32_1 = arith.constant 0 : i32
    return %c0_i32, %c0_i32_0 : i32, i32
  }
  func.func @transform_3(%arg0: i32) -> (i32, i32) {
    %c0_i32 = arith.constant 0 : i32
    %c0_i32_0 = arith.constant 0 : i32
    return %arg0, %c0_i32 : i32, i32
  }
}

</mosaic_0001>

<bundles_post_ra>
// kernel: tpu_custom_call.1
= control target key start
LH: loop header
LB: loop body
LE: loop exit
PB: predicated region body
PF: predicated region fallthrough
CT: control target
= control target key end

     0   :  { %8 = vsyncpa [#allocation3], 0  ;;  %s332_s0 = inlined_call_operand.hbm [shape: f32[8,32], index: 0, kind: input, shape index: {}]   ;;  %s333_s1 = inlined_call_operand.hbm [shape: f32[32,128], index: 1, kind: input, shape index: {}]   ;;  %s334_s2 = inlined_call_operand.vmem [shape: f32[1,128], index: 2, kind: input, shape index: {}]   ;;  %s335_s3 = inlined_call_operand.hbm [shape: f32[8,128], index: 3, kind: output, shape index: {}]  }
   0x1   :  { %9 = vsyncpa [#allocation6], 0 }
   0x2   :  { %10 = vsyncpa [#allocation4], 0  ;;  %s258_s12 = smov [#allocation2]   ;;  %s259_s14 = smov [#allocation5]  }
   0x3   :  { %s17_s13 = sshll.u32 %s258_s12, 4  ;;  %s26_s15 = sshll.u32 %s259_s14, 4  ;;  %s18_s13 = int_to_ptr.vmem [resolvable:$true] %s17_s13  ;;  %s286_s15 = int_to_ptr.vmem [resolvable:$true] %s26_s15 }
   0x4   :  { %s186_s18 = scalar_lea.hbm %s332_s0, 128 }
   0x5   :  { %p187_p0 = scmp.ne.s32.totalorder %s332_s0, %s186_s18  ;;  %p190_p1 = scmp.lt.u32.totalorder %s186_s18, %s332_s0 }
   0x7   :  { %p192_p2 = pnand %p190_p1, %p187_p0 }
   0x9   :  { %195 = shalt.err (!%p192_p2)
}
   0xa   :  { %s196_s23 = scalar_lea.vmem %s18_s13, 128  ;;  %p201_p4 = scmp.lt.s32.totalorder %s18_s13, %s18_s13 }
   0xb   :  { %p197_p3 = scmp.ne.s32.totalorder %s18_s13, %s196_s23  ;;  %p202_p5 = scmp.lt.s32.totalorder %s196_s23, %s196_s23 }
   0xd   :  { %p203_p6 = por %p202_p5, %p201_p4 }
   0xf   :  { %p204_p7 = pnand %p203_p6, %p197_p3 }
  0x11   :  { %207 = shalt.err (!%p204_p7)
}
  0x12   :  { %20 = dma.hbm_to_vmem [thread:$0]  %s332_s0, 128, %s18_s13, [#allocation3]  }
  0x13   :  { %s208_s28 = scalar_lea.hbm %s333_s1, 512 }
  0x14   :  { %p209_p8 = scmp.ne.s32.totalorder %s333_s1, %s208_s28  ;;  %p212_p9 = scmp.lt.u32.totalorder %s208_s28, %s333_s1 }
  0x16   :  { %p214_p10 = pnand %p212_p9, %p209_p8 }
  0x18   :  { %217 = shalt.err (!%p214_p10)
}
  0x19   :  { %s218_s6 = scalar_lea.vmem %s286_s15, 512  ;;  %p223_p12 = scmp.lt.s32.totalorder %s286_s15, %s286_s15 }
  0x1a   :  { %p219_p11 = scmp.ne.s32.totalorder %s286_s15, %s218_s6  ;;  %p224_p13 = scmp.lt.s32.totalorder %s218_s6, %s218_s6 }
  0x1c   :  { %p225_p0 = por %p224_p13, %p223_p12 }
  0x1e   :  { %p226_p1 = pnand %p225_p0, %p219_p11 }
  0x20   :  { %229 = shalt.err (!%p226_p1)
}
  0x21   :  { %s260_s0 = smov 128   ;;  %s261_s7 = smov 8  }
  0x22   :  { %32 = dma.hbm_to_vmem [thread:$0]  %s333_s1, 512, %s286_s15, [#allocation6], %s260_s0, %s260_s0, %s261_s7  }
  0x23   :  { %252 = dma.done.wait [#allocation3], 128  }
  0x24   :  { %253 = vsyncadd [#allocation3], 4294967168 }
  0x25   :  { %254 = dma.done.wait [#allocation6], 512  }
  0x26   :  { %255 = vsyncadd [#allocation6], 4294966784  ;;  %v262_v0 = vmov 0.0|0.0   ;;  %vm263_vm0 = vmmov 0   ;;  %v264_v1 = vmov 0.0   ;;  %v42_v2 = vld [vmem:[#allocation5] sm:$0xff]  ;;  %v127_v16 = vlaneseq }
  0x27   :  { %170 = vmatprep.subr.bf16.mxu0 %v262_v0  ;;  %167 = vmatprep.mubr.msk.f32.mxu0 %vm263_vm0, %v264_v1  ;;  %v43_v3 = vld [vmem:[#allocation5 + $0x8] sm:$0xff]  ;;  %v44_v4 = vld [vmem:[#allocation5 + $0x10] sm:$0xff]  ;;  %v45_v6 = vld [vmem:[#allocation5 + $0x18] sm:$0xff]  ;;  %vm53_vm1 = vcmask 261120   ;;  %s265_s11 = smov [#allocation7]  }
  0x28   :  { %v171_v5 = vpack.c.bf16 %v43_v3, %v42_v2  ;;  %v174_v7 = vpack.c.bf16 %v45_v6, %v44_v4  ;;  %v41_v8 = vld [vmem:[#allocation2] sm:$0xff]  ;;  %v128_v17 = vand.u32 127, %v127_v16  ;;  %s142_s12 = sshll.u32 %s265_s11, 4  ;;  %s143_s12 = int_to_ptr.vmem [resolvable:$true] %s142_s12 }
  0x29   :  { %v152_v9 = vld [vmem:[%s334_s2] ss:$0 sm:$0xff]  ;;  %s230_s13 = scalar_lea.vmem %s143_s12, 128  ;;  %p235_p3 = scmp.lt.s32.totalorder %s143_s12, %s143_s12 }
  0x2a   :  { %172 = vmatpush3.bf16.msra.mxu0 %v171_v5  ;;  %vm133_vm2 = vcmp.lt.s32.totalorder %v128_v17, 16  ;;  %p231_p2 = scmp.ne.s32.totalorder %s143_s12, %s230_s13  ;;  %p236_p4 = scmp.lt.s32.totalorder %s230_s13, %s230_s13 }
  0x2b   :  { %173 = vmatprep.subr.bf16.mxu0 %v262_v0 }
  0x2c   :  { %p237_p5 = por %p236_p4, %p235_p3 }
  0x2e   :  { %175 = vmatpush3.bf16.msra.mxu0 %v174_v7  ;;  %p238_p6 = pnand %p237_p5, %p231_p2 }
  0x31   :  { %168 = vmatmul.mubr.msk.f32.vlgmr.msra.gmra.mrb[0].mxu0 %vm53_vm1, %v41_v8 }
 0x104   :  { %v123_v10 = vpop.f32.mrb[0].mxu0 }
 0x105   :  { %v124_v11 = vadd.f32 %v152_v9, %v123_v10  ;;  %v169_v12 = vpop.f32.mrb[1].mxu0 }
 0x107   :  { %v129_v13 = vmax.f32 %v124_v11, -20.0 }
 0x109   :  { %v130_v14 = vmin.f32 %v129_v13, 2.0 }
 0x10b   :  { %v131_v15 = vmul.f32 1.442695, %v130_v14 }
 0x10d   :  { %184 = vpow2.f32 %v131_v15 }
 0x117   :  { %v185_v18 = vpop.eup %184 }
 0x118   :  { %v134_v19 = vsel %vm133_vm2, %v124_v11, %v185_v18 }
 0x119   :  { %135 = vst [vmem:[#allocation7] sm:$0xff] %v134_v19 }
 0x11a   :  { %241 = shalt.err (!%p238_p6)
}
 0x11b   :  { %s242_s15 = scalar_lea.hbm %s335_s3, 128 }
 0x11c   :  { %p243_p7 = scmp.ne.s32.totalorder %s335_s3, %s242_s15  ;;  %p246_p8 = scmp.lt.u32.totalorder %s242_s15, %s335_s3 }
 0x11e   :  { %p248_p9 = pnand %p246_p8, %p243_p7 }
 0x120   :  { %251 = shalt.err (!%p248_p9)
}
 0x121   :  { %145 = dma.vmem_to_hbm [thread:$0]  %s143_s12, 128, %s335_s3, [#allocation4]  }
 0x122   :  { %256 = dma.done.wait [#allocation4], 128  }
 0x123   :  { %257 = vsyncadd [#allocation4], 4294967168 }
 0x124   :  { %149 = vsyncpa [#allocation3], 1 }
 0x125   :  { %150 = vsyncpa [#allocation6], 1 }
 0x126   :  { %151 = vsyncpa [#allocation4], 1 }

</bundles_post_ra>
